<compile_context>
chip_gen: v7x
topology: tpu7x:2x2x1
jax: 0.10.0
libtpu: 0.0.40
codegen_flags: <defaults>
</compile_context>

<pallas_src>
import jax
import jax.numpy as jnp
from jax.experimental import pallas as pl
from jax.experimental.pallas import tpu as pltpu


NEG_SLOPE = 0.01  # torch.nn.LeakyReLU default


def conv3x3_lrelu_kernel(x_ref, w_ref, b_ref, o_ref, patch_ref):
    # x_ref:     (1, Hp, Wp, Cin)    zero-padded image, resident across the h-tile axis
    # w_ref:     (9*Cin, Cout)       flattened 3x3 taps, resident across the grid
    # b_ref:     (Cout, 1)           bias column
    # o_ref:     (1, Cout, TILE_H*W) transposed output tile (lane-dense store)
    # patch_ref: (TILE_H*W, 9*Cin)   im2col scratch
    cout = o_ref.shape[1]
    tile_hw = o_ref.shape[2]
    cin = x_ref.shape[3]
    wp = x_ref.shape[2]
    w_out = wp - 2
    tile_h = tile_hw // w_out

    h = pl.program_id(1)
    row0 = pl.multiple_of(h * tile_h, tile_h)

    # im2col: pack the 9 shifted windows into one (TILE_H*W, 9*Cin) patch.
    # The (TILE_H, W, Cin) -> (TILE_H*W, Cin) reshape keeps the minor (lane) dim
    # untouched, so it is layout-trivial.
    for dh in range(3):
        for dw in range(3):
            k = dh * 3 + dw
            tap = x_ref[0, pl.ds(row0 + dh, tile_h), dw:dw + w_out, :]
            patch_ref[:, k * cin:(k + 1) * cin] = tap.reshape(tile_hw, cin)

    # Single MXU matmul, K = 9*Cin, f32 accumulation.
    acc = jnp.dot(patch_ref[...], w_ref[...],
                  preferred_element_type=jnp.float32)        # (TILE_H*W, Cout)
    acc_t = acc.T                                            # (Cout, TILE_H*W)
    acc_t = acc_t + b_ref[...].astype(jnp.float32)           # bias
    acc_t = jnp.where(acc_t >= 0, acc_t, NEG_SLOPE * acc_t)  # LeakyReLU
    o_ref[0] = acc_t.astype(o_ref.dtype)


def conv3x3_lrelu_pallas(x_pad_nhwc, w_flat, b_col, tile_h):
    """x_pad_nhwc: (N, H+2, W+2, Cin); w_flat: (9*Cin, Cout); b_col: (Cout, 1).

    Returns the conv+LeakyReLU output as (N, Cout, H*W) ("NC(HW)" order).
    """
    N, Hp, Wp, Cin = x_pad_nhwc.shape
    H, W = Hp - 2, Wp - 2
    KC, Cout = w_flat.shape
    assert KC == 9 * Cin
    assert H % tile_h == 0, "H must be divisible by tile_h"
    n_h_tiles = H // tile_h

    return pl.pallas_call(
        conv3x3_lrelu_kernel,
        out_shape=jax.ShapeDtypeStruct((N, Cout, H * W), x_pad_nhwc.dtype),
        grid=(N, n_h_tiles),
        in_specs=[
            # whole padded image per batch element, resident across h-tiles
            # TODO(synk): for very large images switch to halo-tiled (TILE_H+2)-row
            # input blocks (pl.Element offsets) so blocks fit v7x's 64 MiB VMEM.
            pl.BlockSpec((1, Hp, Wp, Cin), lambda n, h: (n, 0, 0, 0)),
            pl.BlockSpec((KC, Cout), lambda n, h: (0, 0)),   # resident weights
            pl.BlockSpec((Cout, 1), lambda n, h: (0, 0)),    # resident bias
        ],
        out_specs=pl.BlockSpec((1, Cout, tile_h * W), lambda n, h: (n, 0, h)),
        scratch_shapes=[pltpu.VMEM((tile_h * W, KC), x_pad_nhwc.dtype)],
        compiler_params=pltpu.CompilerParams(
            dimension_semantics=("parallel", "parallel"),
            vmem_limit_bytes=48 * 1024 * 1024),
    )(x_pad_nhwc, w_flat, b_col)


def _pick_tile_h(H, W, max_gemm_rows=2048):
    """Largest divisor of H whose GEMM M-dim (tile_h*W) stays modest (VMEM-bounded)."""
    best = 1
    for d in range(1, H + 1):
        if H % d == 0 and d * W <= max_gemm_rows:
            best = d
    return best


def upsample_forward(x_nchw, w_oihw, b, scale_factor=2, tile_h=None):
    """Equivalent of upsample.forward: Conv2d(3x3, pad=1) -> LeakyReLU -> PixelShuffle."""
    N, Cin, H, W = x_nchw.shape
    Crr = w_oihw.shape[0]
    r = scale_factor
    assert Crr % (r * r) == 0
    C = Crr // (r * r)
    if tile_h is None:
        tile_h = _pick_tile_h(H, W)

    # Single input-layout pass: NCHW -> NHWC with zero padding (conv padding=1).
    x_nhwc = jnp.transpose(x_nchw, (0, 2, 3, 1))
    x_pad = jnp.pad(x_nhwc, ((0, 0), (1, 1), (1, 1), (0, 0)))

    # 3x3 taps flattened to one (9*Cin, Cout) GEMM weight; bias as a column.
    w_flat = jnp.transpose(w_oihw, (2, 3, 1, 0)).reshape(9 * Cin, Crr)
    b_col = b.reshape(Crr, 1)

    y = conv3x3_lrelu_pallas(x_pad, w_flat, b_col, tile_h)   # (N, Crr, H*W)

    # PixelShuffle fused with the NCHW restore: one reshape/transpose pass.
    y = y.reshape(N, C, r, r, H, W)                  # (n, c, rh, rw, h, w)
    y = jnp.transpose(y, (0, 1, 4, 2, 5, 3))         # (n, c, h, rh, w, rw)
    return y.reshape(N, C, H * r, W * r)


def _pixel_shuffle_nchw(y, r):
    """y: (N, C*r*r, H, W) -> (N, C, H*r, W*r), matching torch.nn.PixelShuffle."""
    N, Crr, H, W = y.shape
    C = Crr // (r * r)
    y = y.reshape(N, C, r, r, H, W)
    y = jnp.transpose(y, (0, 1, 4, 2, 5, 3))
    return y.reshape(N, C, H * r, W * r)


def _reference(x_nchw, w_oihw, b, scale_factor=2):
    y = jax.lax.conv_general_dilated(
        x_nchw, w_oihw, window_strides=(1, 1), padding=((1, 1), (1, 1)),
        dimension_numbers=("NCHW", "OIHW", "NCHW"))
    y = y + b.reshape(1, -1, 1, 1)
    y = jnp.where(y >= 0, y, NEG_SLOPE * y)
    return _pixel_shuffle_nchw(y, scale_factor)


if __name__ == "__main__":
    key = jax.random.PRNGKey(0)
    N, C_in, C_out, H, W = 2, 4, 4, 16, 16
    scale = 2
    C_conv = C_out * scale ** 2  # 16

    k1, k2, k3 = jax.random.split(key, 3)
    x = jax.random.normal(k1, (N, C_in, H, W), jnp.float32)
    # Deterministic synthetic parameters (Conv2d weight OIHW, bias)
    fan_in = C_in * 3 * 3
    bound = 1.0 / (fan_in ** 0.5)
    w = jax.random.uniform(k2, (C_conv, C_in, 3, 3), jnp.float32, -bound, bound)
    b = jax.random.uniform(k3, (C_conv,), jnp.float32, -bound, bound)

    # tile_h=8 exercises the (N, H_tiles) = (2, 2) spatial-tiled grid.
    fwd = jax.jit(lambda xx, ww, bb: upsample_forward(xx, ww, bb, scale, tile_h=8))
    out = jax.block_until_ready(fwd(x, w, b))

    ref = _reference(x, w, b, scale)
    assert out.shape == (N, C_out, H * scale, W * scale)
    assert jnp.allclose(out, ref, atol=1e-5, rtol=1e-5)

    print("KERNEL_OK")
</pallas_src>

<mosaic_0001>
module attributes {stable_mosaic.version = 11 : i64} {
  func.func @conv3x3_lrelu_kernel(%arg0: i32, %arg1: i32, %arg2: memref<1x18x18x4xf32, #tpu.memory_space<vmem>>, %arg3: memref<36x16xf32, #tpu.memory_space<vmem>>, %arg4: memref<16x1xf32, #tpu.memory_space<vmem>>, %arg5: memref<1x16x128xf32, #tpu.memory_space<vmem>>, %arg6: memref<128x36xf32, #tpu.memory_space<vmem>>) attributes {dimension_semantics = [#tpu.dimension_semantics<parallel>, #tpu.dimension_semantics<parallel>], iteration_bounds = array<i64: 2, 2>, scalar_prefetch = 0 : i64, scratch_operands = 1 : i64, tpu.core_type = #tpu.core_type<tc>, window_params = [{transform_indices = @transform_0, window_bounds = array<i64: 1, 18, 18, 4>}, {pipeline_mode = #tpu.pipeline_mode<synchronous>, transform_indices = @transform_1, window_bounds = array<i64: 36, 16>}, {pipeline_mode = #tpu.pipeline_mode<synchronous>, transform_indices = @transform_2, window_bounds = array<i64: 16, 1>}, {transform_indices = @transform_3, window_bounds = array<i64: 1, 16, 128>}]} {
    %c8_i32 = arith.constant 8 : i32
    %0 = arith.muli %arg1, %c8_i32 : i32
    %1 = tpu.assume_multiple %0, 8 : i32
    %c0_i32 = arith.constant 0 : i32
    %2 = arith.addi %1, %c0_i32 : i32
    %c0 = arith.constant 0 : index
    %3 = arith.index_cast %2 : i32 to index
    %c0_0 = arith.constant 0 : index
    %c0_1 = arith.constant 0 : index
    %4 = vector.load %arg2[%c0, %3, %c0_0, %c0_1] : memref<1x18x18x4xf32, #tpu.memory_space<vmem>>, vector<1x8x16x4xf32>
    %5 = vector.shape_cast %4 : vector<1x8x16x4xf32> to vector<8x16x4xf32>
    %6 = vector.shape_cast %5 : vector<8x16x4xf32> to vector<128x4xf32>
    %c0_2 = arith.constant 0 : index
    %c0_3 = arith.constant 0 : index
    %7 = vector.load %arg6[%c0_2, %c0_3] : memref<128x36xf32, #tpu.memory_space<vmem>>, vector<128x4xf32>
    tpu.vector_store %arg6[%c0_2, %c0_3], %6 {strides = array<i32>} : memref<128x36xf32, #tpu.memory_space<vmem>>, vector<128x4xf32>,
    %c0_i32_4 = arith.constant 0 : i32
    %8 = arith.addi %1, %c0_i32_4 : i32
    %c0_5 = arith.constant 0 : index
    %9 = arith.index_cast %8 : i32 to index
    %c1 = arith.constant 1 : index
    %c0_6 = arith.constant 0 : index
    %10 = vector.load %arg2[%c0_5, %9, %c1, %c0_6] : memref<1x18x18x4xf32, #tpu.memory_space<vmem>>, vector<1x8x16x4xf32>
    %11 = vector.shape_cast %10 : vector<1x8x16x4xf32> to vector<8x16x4xf32>
    %12 = vector.shape_cast %11 : vector<8x16x4xf32> to vector<128x4xf32>
    %c0_7 = arith.constant 0 : index
    %c4 = arith.constant 4 : index
    %13 = vector.load %arg6[%c0_7, %c4] : memref<128x36xf32, #tpu.memory_space<vmem>>, vector<128x4xf32>
    tpu.vector_store %arg6[%c0_7, %c4], %12 {strides = array<i32>} : memref<128x36xf32, #tpu.memory_space<vmem>>, vector<128x4xf32>,
    %c0_i32_8 = arith.constant 0 : i32
    %14 = arith.addi %1, %c0_i32_8 : i32
    %c0_9 = arith.constant 0 : index
    %15 = arith.index_cast %14 : i32 to index
    %c2 = arith.constant 2 : index
    %c0_10 = arith.constant 0 : index
    %16 = vector.load %arg2[%c0_9, %15, %c2, %c0_10] : memref<1x18x18x4xf32, #tpu.memory_space<vmem>>, vector<1x8x16x4xf32>
    %17 = vector.shape_cast %16 : vector<1x8x16x4xf32> to vector<8x16x4xf32>
    %18 = vector.shape_cast %17 : vector<8x16x4xf32> to vector<128x4xf32>
    %c0_11 = arith.constant 0 : index
    %c8 = arith.constant 8 : index
    %19 = vector.load %arg6[%c0_11, %c8] : memref<128x36xf32, #tpu.memory_space<vmem>>, vector<128x4xf32>
    tpu.vector_store %arg6[%c0_11, %c8], %18 {strides = array<i32>} : memref<128x36xf32, #tpu.memory_space<vmem>>, vector<128x4xf32>,
    %c1_i32 = arith.constant 1 : i32
    %20 = arith.addi %1, %c1_i32 : i32
    %c0_12 = arith.constant 0 : index
    %21 = arith.index_cast %20 : i32 to index
    %c0_13 = arith.constant 0 : index
    %c0_14 = arith.constant 0 : index
    %22 = vector.load %arg2[%c0_12, %21, %c0_13, %c0_14] : memref<1x18x18x4xf32, #tpu.memory_space<vmem>>, vector<1x8x16x4xf32>
    %23 = vector.shape_cast %22 : vector<1x8x16x4xf32> to vector<8x16x4xf32>
    %24 = vector.shape_cast %23 : vector<8x16x4xf32> to vector<128x4xf32>
    %c0_15 = arith.constant 0 : index
    %c12 = arith.constant 12 : index
    %25 = vector.load %arg6[%c0_15, %c12] : memref<128x36xf32, #tpu.memory_space<vmem>>, vector<128x4xf32>
    tpu.vector_store %arg6[%c0_15, %c12], %24 {strides = array<i32>} : memref<128x36xf32, #tpu.memory_space<vmem>>, vector<128x4xf32>,
    %c1_i32_16 = arith.constant 1 : i32
    %26 = arith.addi %1, %c1_i32_16 : i32
    %c0_17 = arith.constant 0 : index
    %27 = arith.index_cast %26 : i32 to index
    %c1_18 = arith.constant 1 : index
    %c0_19 = arith.constant 0 : index
    %28 = vector.load %arg2[%c0_17, %27, %c1_18, %c0_19] : memref<1x18x18x4xf32, #tpu.memory_space<vmem>>, vector<1x8x16x4xf32>
    %29 = vector.shape_cast %28 : vector<1x8x16x4xf32> to vector<8x16x4xf32>
    %30 = vector.shape_cast %29 : vector<8x16x4xf32> to vector<128x4xf32>
    %c0_20 = arith.constant 0 : index
    %c16 = arith.constant 16 : index
    %31 = vector.load %arg6[%c0_20, %c16] : memref<128x36xf32, #tpu.memory_space<vmem>>, vector<128x4xf32>
    tpu.vector_store %arg6[%c0_20, %c16], %30 {strides = array<i32>} : memref<128x36xf32, #tpu.memory_space<vmem>>, vector<128x4xf32>,
    %c1_i32_21 = arith.constant 1 : i32
    %32 = arith.addi %1, %c1_i32_21 : i32
    %c0_22 = arith.constant 0 : index
    %33 = arith.index_cast %32 : i32 to index
    %c2_23 = arith.constant 2 : index
    %c0_24 = arith.constant 0 : index
    %34 = vector.load %arg2[%c0_22, %33, %c2_23, %c0_24] : memref<1x18x18x4xf32, #tpu.memory_space<vmem>>, vector<1x8x16x4xf32>
    %35 = vector.shape_cast %34 : vector<1x8x16x4xf32> to vector<8x16x4xf32>
    %36 = vector.shape_cast %35 : vector<8x16x4xf32> to vector<128x4xf32>
    %c0_25 = arith.constant 0 : index
    %c20 = arith.constant 20 : index
    %37 = vector.load %arg6[%c0_25, %c20] : memref<128x36xf32, #tpu.memory_space<vmem>>, vector<128x4xf32>
    tpu.vector_store %arg6[%c0_25, %c20], %36 {strides = array<i32>} : memref<128x36xf32, #tpu.memory_space<vmem>>, vector<128x4xf32>,
    %c2_i32 = arith.constant 2 : i32
    %38 = arith.addi %1, %c2_i32 : i32
    %c0_26 = arith.constant 0 : index
    %39 = arith.index_cast %38 : i32 to index
    %c0_27 = arith.constant 0 : index
    %c0_28 = arith.constant 0 : index
    %40 = vector.load %arg2[%c0_26, %39, %c0_27, %c0_28] : memref<1x18x18x4xf32, #tpu.memory_space<vmem>>, vector<1x8x16x4xf32>
    %41 = vector.shape_cast %40 : vector<1x8x16x4xf32> to vector<8x16x4xf32>
    %42 = vector.shape_cast %41 : vector<8x16x4xf32> to vector<128x4xf32>
    %c0_29 = arith.constant 0 : index
    %c24 = arith.constant 24 : index
    %43 = vector.load %arg6[%c0_29, %c24] : memref<128x36xf32, #tpu.memory_space<vmem>>, vector<128x4xf32>
    tpu.vector_store %arg6[%c0_29, %c24], %42 {strides = array<i32>} : memref<128x36xf32, #tpu.memory_space<vmem>>, vector<128x4xf32>,
    %c2_i32_30 = arith.constant 2 : i32
    %44 = arith.addi %1, %c2_i32_30 : i32
    %c0_31 = arith.constant 0 : index
    %45 = arith.index_cast %44 : i32 to index
    %c1_32 = arith.constant 1 : index
    %c0_33 = arith.constant 0 : index
    %46 = vector.load %arg2[%c0_31, %45, %c1_32, %c0_33] : memref<1x18x18x4xf32, #tpu.memory_space<vmem>>, vector<1x8x16x4xf32>
    %47 = vector.shape_cast %46 : vector<1x8x16x4xf32> to vector<8x16x4xf32>
    %48 = vector.shape_cast %47 : vector<8x16x4xf32> to vector<128x4xf32>
    %c0_34 = arith.constant 0 : index
    %c28 = arith.constant 28 : index
    %49 = vector.load %arg6[%c0_34, %c28] : memref<128x36xf32, #tpu.memory_space<vmem>>, vector<128x4xf32>
    tpu.vector_store %arg6[%c0_34, %c28], %48 {strides = array<i32>} : memref<128x36xf32, #tpu.memory_space<vmem>>, vector<128x4xf32>,
    %c2_i32_35 = arith.constant 2 : i32
    %50 = arith.addi %1, %c2_i32_35 : i32
    %c0_36 = arith.constant 0 : index
    %51 = arith.index_cast %50 : i32 to index
    %c2_37 = arith.constant 2 : index
    %c0_38 = arith.constant 0 : index
    %52 = vector.load %arg2[%c0_36, %51, %c2_37, %c0_38] : memref<1x18x18x4xf32, #tpu.memory_space<vmem>>, vector<1x8x16x4xf32>
    %53 = vector.shape_cast %52 : vector<1x8x16x4xf32> to vector<8x16x4xf32>
    %54 = vector.shape_cast %53 : vector<8x16x4xf32> to vector<128x4xf32>
    %c0_39 = arith.constant 0 : index
    %c32 = arith.constant 32 : index
    %55 = vector.load %arg6[%c0_39, %c32] : memref<128x36xf32, #tpu.memory_space<vmem>>, vector<128x4xf32>
    tpu.vector_store %arg6[%c0_39, %c32], %54 {strides = array<i32>} : memref<128x36xf32, #tpu.memory_space<vmem>>, vector<128x4xf32>,
    %c0_40 = arith.constant 0 : index
    %c0_41 = arith.constant 0 : index
    %56 = vector.load %arg6[%c0_40, %c0_41] : memref<128x36xf32, #tpu.memory_space<vmem>>, vector<128x36xf32>
    %c0_42 = arith.constant 0 : index
    %c0_43 = arith.constant 0 : index
    %57 = vector.load %arg3[%c0_42, %c0_43] : memref<36x16xf32, #tpu.memory_space<vmem>>, vector<36x16xf32>
    %cst = arith.constant dense<0.000000e+00> : vector<128x16xf32>
    %58 = tpu.matmul %56, %57, %cst {dimension_numbers = #tpu.dot_dimension_numbers<[1], [0], [0], [1], [0, 0, 1, 1], [], []>} : vector<128x36xf32>, vector<36x16xf32>, vector<128x16xf32> -> vector<128x16xf32>
    %59 = tpu.transpose %58, [1, 0] : vector<128x16xf32> -> vector<16x128xf32>
    %c0_44 = arith.constant 0 : index
    %c0_45 = arith.constant 0 : index
    %60 = vector.load %arg4[%c0_44, %c0_45] : memref<16x1xf32, #tpu.memory_space<vmem>>, vector<16x1xf32>
    %61 = vector.broadcast %60 : vector<16x1xf32> to vector<16x128xf32>
    %62 = arith.addf %59, %61 : vector<16x128xf32>
    %cst_46 = arith.constant 0.000000e+00 : f32
    %63 = vector.broadcast %cst_46 : f32 to vector<16x128xf32>
    %64 = arith.cmpf oge, %62, %63 : vector<16x128xf32>
    %cst_47 = arith.constant 0.00999999977 : f32
    %65 = vector.broadcast %cst_47 : f32 to vector<16x128xf32>
    %66 = arith.mulf %65, %62 : vector<16x128xf32>
    %67 = arith.select %64, %62, %66 : vector<16x128xi1>, vector<16x128xf32>
    %c0_48 = arith.constant 0 : index
    %c0_49 = arith.constant 0 : index
    %c0_50 = arith.constant 0 : index
    %68 = vector.load %arg5[%c0_48, %c0_49, %c0_50] : memref<1x16x128xf32, #tpu.memory_space<vmem>>, vector<1x16x128xf32>
    %69 = vector.shape_cast %68 : vector<1x16x128xf32> to vector<16x128xf32>
    %70 = vector.shape_cast %67 : vector<16x128xf32> to vector<1x16x128xf32>
    tpu.vector_store %arg5[%c0_48, %c0_49, %c0_50], %70 {strides = array<i32>} : memref<1x16x128xf32, #tpu.memory_space<vmem>>, vector<1x16x128xf32>,
    return
  }
  func.func @transform_0(%arg0: i32, %arg1: i32) -> (i32, i32, i32, i32) {
    %c0_i32 = arith.constant 0 : i32
    %c0_i32_0 = arith.constant 0 : i32
    %c0_i32_1 = arith.constant 0 : i32
    %c0_i32_2 = arith.constant 0 : i32
    return %arg0, %c0_i32, %c0_i32_0, %c0_i32_1 : i32, i32, i32, i32
  }
  func.func @transform_1(%arg0: i32, %arg1: i32) -> (i32, i32) {
    %c0_i32 = arith.constant 0 : i32
    %c0_i32_0 = arith.constant 0 : i32
    %c0_i32_1 = arith.constant 0 : i32
    return %c0_i32, %c0_i32_0 : i32, i32
  }
  func.func @transform_2(%arg0: i32, %arg1: i32) -> (i32, i32) {
    %c0_i32 = arith.constant 0 : i32
    %c0_i32_0 = arith.constant 0 : i32
    %c0_i32_1 = arith.constant 0 : i32
    return %c0_i32, %c0_i32_0 : i32, i32
  }
  func.func @transform_3(%arg0: i32, %arg1: i32) -> (i32, i32, i32) {
    %c0_i32 = arith.constant 0 : i32
    %c0_i32_0 = arith.constant 0 : i32
    return %arg0, %c0_i32, %arg1 : i32, i32, i32
  }
}

</mosaic_0001>

<bundles_post_ra>
// kernel: _lambda_.1
= control target key start
LH: loop header
LB: loop body
LE: loop exit
PB: predicated region body
PF: predicated region fallthrough
CT: control target
= control target key end

     0   :  { %s1744_s12 = smov 0   ;;  %s1746_s13 = smov 0   ;;  %s2259_s0 = inlined_call_operand.vmem [shape: f32[2,18,18,4], index: 0, kind: input, shape index: {}]   ;;  %s2260_s1 = inlined_call_operand.vmem [shape: f32[36,16], index: 1, kind: input, shape index: {}]   ;;  %s2261_s2 = inlined_call_operand.vmem [shape: f32[16,1], index: 2, kind: input, shape index: {}]   ;;  %s2262_s3 = inlined_call_operand.vmem [shape: f32[2,16,256], index: 3, kind: output, shape index: {}]  }
   0x1   :  { %s1748_s14 = smov 0   ;;  %s1750_s15 = smov 0  }
   0x2   :  { %s1752_s16 = smov 0   ;;  %s1754_s17 = smov 0  }
   0x3   :  { %s1756_s18 = smov 0  }
   0x4 LB: > { %s22_s19 = sadd.s32 1, %s1705_s16  ;;  %s25_s20 = sadd.s32 1, %s1709_s17  ;;  %s1713_s18 = sphi %s1756_s18, %s13_s18   ;;  %s1709_s17 = sphi %s1754_s17, %s2269_s17   ;;  %s1705_s16 = sphi %s1752_s16, %s2268_s16   ;;  %s1701_s15 = sphi %s1750_s15, %s2267_s15   ;;  %s1697_s14 = sphi %s1748_s14, %s2266_s14   ;;  %s1693_s13 = sphi %s1746_s13, %s2265_s13   ;;  %s1689_s12 = sphi %s1744_s12, %s2264_s12  }
   0x5   : > { %p23_p0 = scmp.ge.s32.totalorder %s22_s19, 2  ;;  %s1391_s21 = sadd.s32 4294967295, %s1713_s18  }
   0x6   : > { %p112_p1 = scmp.ne.s32.totalorder %s1693_s13, %s1689_s12  ;;  %p113_p2 = scmp.eq.s32.totalorder %s1391_s21, 3 }
   0x7   : > { %s2271_s19 = smov (%p23_p0, %s22_s19), 0  ;;  %s2273_s20 = smov (!%p23_p0, %s25_s20), %s1709_s17 }
   0x8   : > { %s98_s22 = ssub.s32 %s1705_s16, %s2271_s19  ;;  %p27_p3 = scmp.ge.s32.totalorder %s2273_s20, 2 }
   0x9   : > { %p1395_p4 = scmp.ge.s32.totalorder %s1713_s18, 1  ;;  %p1790_p5 = por %p113_p2, %p112_p1 }
   0xa   : > { %p151_p6 = scmp.lt.s32.totalorder %s1713_s18, 5  ;;  %s2275_s20 = smov (%p27_p3, %s2273_s20), 0 }
   0xb   : > { %s97_s24 = ssub.s32 %s1709_s17, %s2275_s20  ;;  %s102_s26 = sadd.s32 1, %s1693_s13 }
   0xc   : > { %p152_p7 = pnand %p1395_p4, %p151_p6  ;;  %s99_s25 = sor.u32 %s98_s22, %s97_s24 }
   0xd   : > { %p100_p8 = scmp.eq.s32.totalorder %s99_s25, 0  ;;  %p174_p9 = scmp.lt.s32.totalorder (!%p152_p7), %s1701_s15, 1  ;;  %vm198_vm0 = vcmask (!%p152_p7), 31744   ;;  %v1013_v22 = vld [vmem:[%s2260_s1] sm:$0xff] (!%p152_p7)  ;;  %v1014_v23 = vld [vmem:[%s2260_s1 + $0x8] sm:$0xff] (!%p152_p7)  ;;  %v1015_v26 = vld [vmem:[%s2260_s1 + $0x10] sm:$0xff] (!%p152_p7) }
   0xe   : > { %155 = sbr.rel (%p152_p7) target bundleno = 709 (0x2c5), region = 32  ;;  %s1715_s8 = smov (!%p152_p7), 8   ;;  %v1577_v25 = vpack.c.bf16 (!%p152_p7), %v1014_v23, %v1013_v22  ;;  %v1016_v27 = vld [vmem:[%s2260_s1 + $0x18] sm:$0xff] (!%p152_p7)  ;;  %v1017_v31 = vld [vmem:[%s2260_s1 + $0x20] sm:$0xf] (!%p152_p7)  ;;  %vm1067_vm1 = vcmask (!%p152_p7), 1043456  }
   0xf   : > { %s1801_s27 = scalar_select %p100_p8, %s1693_s13, %s102_s26  }
  0x10   : > { %s1399_s29 = smul.u32 (!%p152_p7), 192, %s1697_s14  ;;  %s1716_s9 = smov (!%p152_p7), 4   ;;  %1578 = vmatprep.subr.bf16.mxu0 (!%p152_p7), %v1577_v25  ;;  %1585 = vmatprep.subr.bf16.mxu1 (!%p152_p7), %v1577_v25  ;;  %v1581_v28 = vpack.c.bf16 (!%p152_p7), %v1016_v27, %v1015_v26  ;;  %vm295_vm2 = vcmask (!%p152_p7), 64544   ;;  %vm392_vm3 = vcmask (!%p152_p7), 97344   ;;  %vm492_vm4 = vcmask (!%p152_p7), 130144  }
  0x11   : > { %s1717_s10 = smov (!%p152_p7), 12   ;;  %s1718_s11 = smov (!%p152_p7), 16   ;;  %1580 = vmatpush3.bf16.msra.mxu0 (!%p152_p7), %v1577_v25  ;;  %1588 = vmatpush3.bf16.msra.mxu1 (!%p152_p7), %v1577_v25  ;;  %vm589_vm5 = vcmask (!%p152_p7), 162944   ;;  %vm686_vm6 = vcmask (!%p152_p7), 195744   ;;  %vm786_vm7 = vcmask (!%p152_p7), 228544   ;;  %vm883_vm8 = vcmask (!%p152_p7), 261344  }
  0x12   : > { %s1719_s21 = smov (!%p152_p7), 20   ;;  %s1720_s22 = smov (!%p152_p7), 24   ;;  %1582 = vmatprep.subr.bf16.mxu0 (!%p152_p7), %v1581_v28  ;;  %1586 = vmatprep.subr.bf16.mxu1 (!%p152_p7), %v1581_v28  ;;  %vm980_vm9 = vcmask (!%p152_p7), 294144   ;;  %vm1018_vm10 = vcmask (!%p152_p7), 293888  }
  0x13   : > { %s1722_s24 = smov (!%p152_p7), 32  }
  0x15   : > { %s175_s28 = scalar_select %p174_p9, %s1701_s15, 1  ;;  %1584 = vmatpush3.bf16.msra.mxu0 %v1581_v28  ;;  %1589 = vmatpush3.bf16.msra.mxu1 %v1581_v28 }
  0x16   : > { %1551 = vmatprep.subr.msk.mxu0 %vm1067_vm1, %v1017_v31  ;;  %1587 = vmatprep.subr.msk.mxu1 %vm1067_vm1, %v1017_v31 }
  0x17   : > { %s1591_s30 = smul.u32 432, %s175_s28 }
  0x19   : > { %s178_s6 = scalar_lea.vmem %s2259_s0, %s1591_s30  ;;  %1552 = vmatpush3.msk.msra.mxu0 %vm1067_vm1, %v1017_v31  ;;  %1590 = vmatpush3.msk.msra.mxu1 %vm1067_vm1, %v1017_v31 }
  0x1a   : > { %s1809_s7 = scalar_lea.vmem %s178_s6, %s1399_s29  ;;  %s1721_s29 = smov 28  }
  0x1b   : > { %v312_v0 = vld [vmem:[%s1809_s7 + $0x2] sm:$0xff]  ;;  %v313_v3 = vld [vmem:[%s1809_s7 + $0xa] sm:$0xff]  ;;  %v1402_v5 = vld [vmem:[%s1809_s7 + $0x18] sm:$0xff] }
  0x1c   : > { %v215_v1 = vld [vmem:[%s1809_s7 + $0x1] sm:$0xff]  ;;  %344 = vrot.lane.b32.xlu1 %v312_v0, %s1715_s8  ;;  %v216_v4 = vld [vmem:[%s1809_s7 + $0x9] sm:$0xff]  ;;  %201 = vst.msk [vmem:[#allocation2 + $0x10] sm:$0xff] %vm198_vm0, %v1402_v5  ;;  %v1453_v7 = vld [vmem:[%s1809_s7 + $0x38] sm:$0xff] }
  0x1d   : > { %247 = vrot.lane.b32.xlu0 %v215_v1, %s1716_s9  ;;  %v1403_v2 = vld [vmem:[%s1809_s7 + $0x20] sm:$0xff]  ;;  %v1452_v6 = vld [vmem:[%s1809_s7 + $0x30] sm:$0xff]  ;;  %204 = vst.msk [vmem:[#allocation2 + $0x28] sm:$0xff] %vm198_vm0, %v1453_v7  ;;  %v1828_v8 = vld [vmem:[%s1809_s7 + $0x48] sm:$0xff] }
  0x1e   : > { %202 = vst.msk [vmem:[#allocation2 + $0x18] sm:$0xff] %vm198_vm0, %v1403_v2  ;;  %203 = vst.msk [vmem:[#allocation2 + $0x20] sm:$0xff] %vm198_vm0, %v1452_v6  ;;  %v1831_v9 = vld [vmem:[%s1809_s7 + $0x50] sm:$0xff]  ;;  %v1838_v10 = vld [vmem:[%s1809_s7 + $0x60] sm:$0xff] }
  0x1f   : > { %205 = vst.msk [vmem:[#allocation2 + $0x30] sm:$0xff] %vm198_vm0, %v1828_v8  ;;  %206 = vst.msk [vmem:[#allocation2 + $0x38] sm:$0xff] %vm198_vm0, %v1831_v9  ;;  %v1841_v11 = vld [vmem:[%s1809_s7 + $0x68] sm:$0xff]  ;;  %v217_v12 = vld [vmem:[%s1809_s7 + $0x19] sm:$0xff] }
  0x20   : > { %346 = vrot.lane.b32.xlu1 %v313_v3, %s1715_s8  ;;  %207 = vst.msk [vmem:[#allocation2 + $0x40] sm:$0xff] %vm198_vm0, %v1838_v10  ;;  %208 = vst.msk [vmem:[#allocation2 + $0x48] sm:$0xff] %vm198_vm0, %v1841_v11  ;;  %v182_v13 = vld [vmem:[%s1809_s7] sm:$0xff]  ;;  %v183_v14 = vld [vmem:[%s1809_s7 + $0x8] sm:$0xff] }
  0x21   : > { %249 = vrot.lane.b32.xlu0 %v216_v4, %s1716_s9  ;;  %199 = vst.msk [vmem:[#allocation2] sm:$0xff] %vm198_vm0, %v182_v13  ;;  %200 = vst.msk [vmem:[#allocation2 + $0x8] sm:$0xff] %vm198_vm0, %v183_v14  ;;  %v1855_v15 = vld [vmem:[%s1809_s7 + $0x78] sm:$0xff]  ;;  %v1858_v16 = vld [vmem:[%s1809_s7 + $0x80] sm:$0xff] }
  0x22   : > { %209 = vst.msk [vmem:[#allocation2 + $0x50] sm:$0xff] %vm198_vm0, %v1855_v15  ;;  %210 = vst.msk [vmem:[#allocation2 + $0x58] sm:$0xff] %vm198_vm0, %v1858_v16  ;;  %v1434_v17 = vld [vmem:[%s1809_s7 + $0x1a] sm:$0xff]  ;;  %v1435_v19 = vld [vmem:[%s1809_s7 + $0x22] sm:$0xff] }
  0x23   : > { %v1419_v18 = vld [vmem:[%s1809_s7 + $0x21] sm:$0xff]  ;;  %v1874_v20 = vld [vmem:[%s1809_s7 + $0x90] sm:$0xff]  ;;  %v1890_v24 = vld [vmem:[%s1809_s7 + $0x98] sm:$0xff] }
  0x24   : > { %446 = vrot.lane.b32.xlu1 %v1403_v2, %s1717_s10  ;;  %211 = vst.msk [vmem:[#allocation2 + $0x60] sm:$0xff] %vm198_vm0, %v1874_v20  ;;  %v1468_v21 = vld [vmem:[%s1809_s7 + $0x31] sm:$0xff]  ;;  %212 = vst.msk [vmem:[#allocation2 + $0x68] sm:$0xff] %vm198_vm0, %v1890_v24  ;;  %v1469_v30 = vld [vmem:[%s1809_s7 + $0x39] sm:$0xff] }
  0x25   : > { %444 = vrot.lane.b32.xlu0 %v1402_v5, %s1717_s10  ;;  %v1484_v29 = vld [vmem:[%s1809_s7 + $0x32] sm:$0xff]  ;;  %v1485_v32 = vld [vmem:[%s1809_s7 + $0x3a] sm:$0xff]  ;;  %v1919_v33 = vld [vmem:[%s1809_s7 + $0xa8] sm:$0xff] }
  0x26   : > { %213 = vst.msk [vmem:[#allocation2 + $0x70] sm:$0xff] %vm198_vm0, %v1919_v33  ;;  %v1470_v34 = vld [vmem:[%s1809_s7 + $0x49] sm:$0xff]  ;;  %v1471_v37 = vld [vmem:[%s1809_s7 + $0x51] sm:$0xff]  ;;  %v1472_v39 = vld [vmem:[%s1809_s7 + $0x61] sm:$0xff] }
  0x27   : > { %v1931_v35 = vld [vmem:[%s1809_s7 + $0xb0] sm:$0xff]  ;;  %v1488_v40 = vld [vmem:[%s1809_s7 + $0x62] sm:$0xff]  ;;  %v1474_v49 = vld [vmem:[%s1809_s7 + $0x79] sm:$0xff] }
  0x28   : > { %251 = vrot.lane.b32.xlu1 %v217_v12, %s1716_s9  ;;  %214 = vst.msk [vmem:[#allocation2 + $0x78] sm:$0xff] %vm198_vm0, %v1931_v35  ;;  %v1486_v36 = vld [vmem:[%s1809_s7 + $0x4a] sm:$0xff]  ;;  %v1487_v38 = vld [vmem:[%s1809_s7 + $0x52] sm:$0xff]  ;;  %v1490_v54 = vld [vmem:[%s1809_s7 + $0x7a] sm:$0xff] }
  0x29   : > { %541 = vrot.lane.b32.xlu0 %v217_v12, %s1718_s11  ;;  %v1473_v41 = vld [vmem:[%s1809_s7 + $0x69] sm:$0xff]  ;;  %v1475_v55 = vld [vmem:[%s1809_s7 + $0x81] sm:$0xff]  ;;  %v1476_v5 = vld [vmem:[%s1809_s7 + $0x91] sm:$0xff] }
  0x2a   : > { %v1489_v42 = vld [vmem:[%s1809_s7 + $0x6a] sm:$0xff]  ;;  %v1491_v60 = vld [vmem:[%s1809_s7 + $0x82] sm:$0xff]  ;;  %v1477_v12 = vld [vmem:[%s1809_s7 + $0x99] sm:$0xff] }
  0x2b   : > { %v1478_v27 = vld [vmem:[%s1809_s7 + $0xa9] sm:$0xff] }
  0x2c   : > { %638 = vrot.lane.b32.xlu1 %v1434_v17, %s1719_s21 }
  0x2d   : > { %543 = vrot.lane.b32.xlu0 %v1419_v18, %s1718_s11 }
  0x30   : > { %348 = vrot.lane.b32.xlu1 %v1434_v17, %s1715_s8 }
  0x31   : > { %253 = vrot.lane.b32.xlu0 %v1419_v18, %s1716_s9  ;;  %v1493_v18 = vld [vmem:[%s1809_s7 + $0x9a] sm:$0xff] }
  0x34   : > { %738 = vrot.lane.b32.xlu1 %v1452_v6, %s1720_s22 }
  0x35   : > { %640 = vrot.lane.b32.xlu0 %v1435_v19, %s1719_s21 }
  0x38   : > { %448 = vrot.lane.b32.xlu1 %v1452_v6, %s1717_s10 }
  0x39   : > { %350 = vrot.lane.b32.xlu0 %v1435_v19, %s1715_s8 }
  0x3c   : > { %835 = vrot.lane.b32.xlu1 %v1468_v21, %s1721_s29 }
  0x3d   : > { %740 = vrot.lane.b32.xlu0 %v1453_v7, %s1720_s22 }
  0x40   : > { %545 = vrot.lane.b32.xlu1 %v1468_v21, %s1718_s11 }
  0x41   : > { %450 = vrot.lane.b32.xlu0 %v1453_v7, %s1717_s10 }
  0x44   : > { %932 = vrot.lane.b32.xlu1 %v1484_v29, %s1722_s24 }
  0x45   : > { %837 = vrot.lane.b32.xlu0 %v1469_v30, %s1721_s29 }
  0x48   : > { %547 = vrot.lane.b32.xlu1 %v1469_v30, %s1718_s11 }
  0x49   : > { %255 = vrot.lane.b32.xlu0 %v1468_v21, %s1716_s9 }
  0x4c   : > { %934 = vrot.lane.b32.xlu1 %v1485_v32, %s1722_s24 }
  0x4d   : > { %642 = vrot.lane.b32.xlu0 %v1484_v29, %s1719_s21 }
  0x50   : > { %352 = vrot.lane.b32.xlu1 %v1484_v29, %s1715_s8 }
  0x51   : > { %257 = vrot.lane.b32.xlu0 %v1469_v30, %s1716_s9 }
  0x54   : > { %742 = vrot.lane.b32.xlu1 %v1828_v8, %s1720_s22 }
  0x55   : > { %644 = vrot.lane.b32.xlu0 %v1485_v32, %s1719_s21 }
  0x58   : > { %452 = vrot.lane.b32.xlu1 %v1828_v8, %s1717_s10 }
  0x59   : > { %354 = vrot.lane.b32.xlu0 %v1485_v32, %s1715_s8 }
  0x5c   : > { %839 = vrot.lane.b32.xlu1 %v1470_v34, %s1721_s29 }
  0x5d   : > { %744 = vrot.lane.b32.xlu0 %v1831_v9, %s1720_s22 }
  0x60   : > { %549 = vrot.lane.b32.xlu1 %v1470_v34, %s1718_s11 }
  0x61   : > { %454 = vrot.lane.b32.xlu0 %v1831_v9, %s1717_s10 }
  0x64   : > { %936 = vrot.lane.b32.xlu1 %v1486_v36, %s1722_s24 }
  0x65   : > { %841 = vrot.lane.b32.xlu0 %v1471_v37, %s1721_s29 }
  0x68   : > { %551 = vrot.lane.b32.xlu1 %v1471_v37, %s1718_s11 }
  0x69   : > { %259 = vrot.lane.b32.xlu0 %v1470_v34, %s1716_s9  ;;  %v1479_v34 = vld [vmem:[%s1809_s7 + $0xb1] sm:$0xff] }
  0x6c   : > { %938 = vrot.lane.b32.xlu1 %v1487_v38, %s1722_s24 }
  0x6d   : > { %646 = vrot.lane.b32.xlu0 %v1486_v36, %s1719_s21 }
  0x70   : > { %356 = vrot.lane.b32.xlu1 %v1486_v36, %s1715_s8 }
  0x71   : > { %261 = vrot.lane.b32.xlu0 %v1471_v37, %s1716_s9 }
  0x74   : > { %746 = vrot.lane.b32.xlu1 %v1838_v10, %s1720_s22 }
  0x75   : > { %648 = vrot.lane.b32.xlu0 %v1487_v38, %s1719_s21 }
  0x78   : > { %456 = vrot.lane.b32.xlu1 %v1838_v10, %s1717_s10 }
  0x79   : > { %358 = vrot.lane.b32.xlu0 %v1487_v38, %s1715_s8 }
  0x7c   : > { %843 = vrot.lane.b32.xlu1 %v1472_v39, %s1721_s29 }
  0x7d   : > { %748 = vrot.lane.b32.xlu0 %v1841_v11, %s1720_s22 }
  0x80   : > { %553 = vrot.lane.b32.xlu1 %v1472_v39, %s1718_s11 }
  0x81   : > { %458 = vrot.lane.b32.xlu0 %v1841_v11, %s1717_s10  ;;  %v1492_v11 = vld [vmem:[%s1809_s7 + $0x92] sm:$0xff] }
  0x84   : > { %940 = vrot.lane.b32.xlu1 %v1488_v40, %s1722_s24 }
  0x85   : > { %845 = vrot.lane.b32.xlu0 %v1473_v41, %s1721_s29 }
  0x88   : > { %555 = vrot.lane.b32.xlu1 %v1473_v41, %s1718_s11 }
  0x89   : > { %263 = vrot.lane.b32.xlu0 %v1472_v39, %s1716_s9 }
  0x8c   : > { %942 = vrot.lane.b32.xlu1 %v1489_v42, %s1722_s24 }
  0x8d   : > { %650 = vrot.lane.b32.xlu0 %v1488_v40, %s1719_s21 }
  0x8e   : > { %v345_v43 = vpop.permute.xlu1 %344 }
  0x8f   : > { %v248_v44 = vpop.permute.xlu0 %247 }
  0x90   : > { %296 = vst.msk [vmem:[#allocation2] sm:$0xff] %vm295_vm2, %v248_v44  ;;  %360 = vrot.lane.b32.xlu1 %v1488_v40, %s1715_s8 }
  0x91   : > { %265 = vrot.lane.b32.xlu0 %v1473_v41, %s1716_s9  ;;  %393 = vst.msk [vmem:[#allocation2] sm:$0xff] %vm392_vm3, %v345_v43 }
  0x92   : > { %v347_v45 = vpop.permute.xlu1 %346 }
  0x93   : > { %v250_v46 = vpop.permute.xlu0 %249 }
  0x94   : > { %297 = vst.msk [vmem:[#allocation2 + $0x8] sm:$0xff] %vm295_vm2, %v250_v46  ;;  %750 = vrot.lane.b32.xlu1 %v1855_v15, %s1720_s22  ;;  %v1723_v46 = vmov 0  }
  0x95   : > { %652 = vrot.lane.b32.xlu0 %v1489_v42, %s1719_s21  ;;  %394 = vst.msk [vmem:[#allocation2 + $0x8] sm:$0xff] %vm392_vm3, %v347_v45  ;;  %v1464_v45 = vld [vmem:[%s1809_s7 + $0xc0] sm:$0xff]  ;;  %1658 = vset.pattern.permute.xlu1 %v1723_v46 }
  0x96   : > { %v447_v47 = vpop.permute.xlu1 %446  ;;  %1657 = vset.pattern.permute.xlu0 %v1723_v46 }
  0x97   : > { %v445_v48 = vpop.permute.xlu0 %444  ;;  %494 = vst.msk [vmem:[#allocation2 + $0x8] sm:$0xff] %vm492_vm4, %v447_v47 }
  0x98   : > { %493 = vst.msk [vmem:[#allocation2] sm:$0xff] %vm492_vm4, %v445_v48  ;;  %460 = vrot.lane.b32.xlu1 %v1855_v15, %s1717_s10 }
  0x99   : > { %362 = vrot.lane.b32.xlu0 %v1489_v42, %s1715_s8 }
  0x9a   : > { %v252_v50 = vpop.permute.xlu1 %251 }
  0x9b   : > { %v542_v51 = vpop.permute.xlu0 %541  ;;  %298 = vst.msk [vmem:[#allocation2 + $0x10] sm:$0xff] %vm295_vm2, %v252_v50 }
  0x9c   : > { %590 = vst.msk [vmem:[#allocation2] sm:$0xff] %vm589_vm5, %v542_v51  ;;  %847 = vrot.lane.b32.xlu1 %v1474_v49, %s1721_s29  ;;  %v1465_v51 = vld [vmem:[%s1809_s7 + $0xc8] sm:$0xff] }
  0x9d   : > { %752 = vrot.lane.b32.xlu0 %v1858_v16, %s1720_s22 }
  0x9e   : > { %v639_v52 = vpop.permute.xlu1 %638 }
  0x9f   : > { %v544_v53 = vpop.permute.xlu0 %543  ;;  %687 = vst.msk [vmem:[#allocation2] sm:$0xff] %vm686_vm6, %v639_v52  ;;  %v1480_v52 = vld [vmem:[%s1809_s7 + $0xc1] sm:$0xff] }
  0xa0   : > { %591 = vst.msk [vmem:[#allocation2 + $0x8] sm:$0xff] %vm589_vm5, %v544_v53  ;;  %557 = vrot.lane.b32.xlu1 %v1474_v49, %s1718_s11 }
  0xa1   : > { %462 = vrot.lane.b32.xlu0 %v1858_v16, %s1717_s10 }
  0xa2   : > { %v349_v56 = vpop.permute.xlu1 %348 }
  0xa3   : > { %v254_v57 = vpop.permute.xlu0 %253  ;;  %395 = vst.msk [vmem:[#allocation2 + $0x10] sm:$0xff] %vm392_vm3, %v349_v56 }
  0xa4   : > { %299 = vst.msk [vmem:[#allocation2 + $0x18] sm:$0xff] %vm295_vm2, %v254_v57  ;;  %944 = vrot.lane.b32.xlu1 %v1490_v54, %s1722_s24 }
  0xa5   : > { %849 = vrot.lane.b32.xlu0 %v1475_v55, %s1721_s29 }
  0xa6   : > { %v739_v58 = vpop.permute.xlu1 %738 }
  0xa7   : > { %v641_v59 = vpop.permute.xlu0 %640  ;;  %787 = vst.msk [vmem:[#allocation2] sm:$0xff] %vm786_vm7, %v739_v58  ;;  %v1481_v58 = vld [vmem:[%s1809_s7 + $0xc9] sm:$0xff] }
  0xa8   : > { %688 = vst.msk [vmem:[#allocation2 + $0x8] sm:$0xff] %vm686_vm6, %v641_v59  ;;  %559 = vrot.lane.b32.xlu1 %v1475_v55, %s1718_s11  ;;  %v1496_v59 = vld [vmem:[%s1809_s7 + $0xc2] sm:$0xff] }
  0xa9   : > { %267 = vrot.lane.b32.xlu0 %v1474_v49, %s1716_s9 }
  0xaa   : > { %v449_v61 = vpop.permute.xlu1 %448 }
  0xab   : > { %v351_v62 = vpop.permute.xlu0 %350  ;;  %495 = vst.msk [vmem:[#allocation2 + $0x10] sm:$0xff] %vm492_vm4, %v449_v61 }
  0xac   : > { %396 = vst.msk [vmem:[#allocation2 + $0x18] sm:$0xff] %vm392_vm3, %v351_v62  ;;  %946 = vrot.lane.b32.xlu1 %v1491_v60, %s1722_s24 }
  0xad   : > { %654 = vrot.lane.b32.xlu0 %v1490_v54, %s1719_s21 }
  0xae   : > { %v836_v63 = vpop.permute.xlu1 %835 }
  0xaf   : > { %v741_v0 = vpop.permute.xlu0 %740  ;;  %884 = vst.msk [vmem:[#allocation2] sm:$0xff] %vm883_vm8, %v836_v63 }
  0xb0   : > { %788 = vst.msk [vmem:[#allocation2 + $0x8] sm:$0xff] %vm786_vm7, %v741_v0  ;;  %364 = vrot.lane.b32.xlu1 %v1490_v54, %s1715_s8 }
  0xb1   : > { %269 = vrot.lane.b32.xlu0 %v1475_v55, %s1716_s9 }
  0xb2   : > { %v546_v1 = vpop.permute.xlu1 %545 }
  0xb3   : > { %v451_v2 = vpop.permute.xlu0 %450  ;;  %592 = vst.msk [vmem:[#allocation2 + $0x10] sm:$0xff] %vm589_vm5, %v546_v1  ;;  %v1497_v1 = vld [vmem:[%s1809_s7 + $0xca] sm:$0xff] }
  0xb4   : > { %496 = vst.msk [vmem:[#allocation2 + $0x18] sm:$0xff] %vm492_vm4, %v451_v2  ;;  %754 = vrot.lane.b32.xlu1 %v1874_v20, %s1720_s22 }
  0xb5   : > { %656 = vrot.lane.b32.xlu0 %v1491_v60, %s1719_s21 }
  0xb6   : > { %v933_v3 = vpop.permute.xlu1 %932 }
  0xb7   : > { %v838_v4 = vpop.permute.xlu0 %837  ;;  %981 = vst.msk [vmem:[#allocation2] sm:$0xff] %vm980_vm9, %v933_v3 }
  0xb8   : > { %885 = vst.msk [vmem:[#allocation2 + $0x8] sm:$0xff] %vm883_vm8, %v838_v4  ;;  %464 = vrot.lane.b32.xlu1 %v1874_v20, %s1717_s10  ;;  %v1466_v4 = vld [vmem:[%s1809_s7 + $0xd8] sm:$0xff] }
  0xb9   : > { %366 = vrot.lane.b32.xlu0 %v1491_v60, %s1715_s8 }
  0xba   : > { %v548_v6 = vpop.permute.xlu1 %547 }
  0xbb   : > { %v256_v7 = vpop.permute.xlu0 %255  ;;  %593 = vst.msk [vmem:[#allocation2 + $0x18] sm:$0xff] %vm589_vm5, %v548_v6 }
  0xbc   : > { %300 = vst.msk [vmem:[#allocation2 + $0x20] sm:$0xff] %vm295_vm2, %v256_v7  ;;  %851 = vrot.lane.b32.xlu1 %v1476_v5, %s1721_s29 }
  0xbd   : > { %756 = vrot.lane.b32.xlu0 %v1890_v24, %s1720_s22 }
  0xbe   : > { %v935_v8 = vpop.permute.xlu1 %934  ;;  %v997_v10 = vld [vmem:[#allocation2] sm:$0xff] }
  0xbf   : > { %v643_v9 = vpop.permute.xlu0 %642  ;;  %982 = vst.msk [vmem:[#allocation2 + $0x8] sm:$0xff] %vm980_vm9, %v935_v8  ;;  %1553 = vmatprep.mubr.msk.f32.mxu0 %vm1018_vm10, %v997_v10  ;;  %v1482_v8 = vld [vmem:[%s1809_s7 + $0xd9] sm:$0xff] }
  0xc0   : > { %689 = vst.msk [vmem:[#allocation2 + $0x10] sm:$0xff] %vm686_vm6, %v643_v9  ;;  %561 = vrot.lane.b32.xlu1 %v1476_v5, %s1718_s11  ;;  %v1483_v9 = vld [vmem:[%s1809_s7 + $0xe1] sm:$0xff] }
  0xc1   : > { %466 = vrot.lane.b32.xlu0 %v1890_v24, %s1717_s10 }
  0xc2   : > { %v353_v13 = vpop.permute.xlu1 %352 }
  0xc3   : > { %v258_v14 = vpop.permute.xlu0 %257  ;;  %397 = vst.msk [vmem:[#allocation2 + $0x20] sm:$0xff] %vm392_vm3, %v353_v13  ;;  %v1499_v13 = vld [vmem:[%s1809_s7 + $0xe2] sm:$0xff] }
  0xc4   : > { %301 = vst.msk [vmem:[#allocation2 + $0x28] sm:$0xff] %vm295_vm2, %v258_v14  ;;  %948 = vrot.lane.b32.xlu1 %v1492_v11, %s1722_s24 }
  0xc5   : > { %853 = vrot.lane.b32.xlu0 %v1477_v12, %s1721_s29 }
  0xc6   : > { %v743_v15 = vpop.permute.xlu1 %742  ;;  %v998_v17 = vld [vmem:[#allocation2 + $0x8] sm:$0xff] }
  0xc7   : > { %v645_v16 = vpop.permute.xlu0 %644  ;;  %789 = vst.msk [vmem:[#allocation2 + $0x10] sm:$0xff] %vm786_vm7, %v743_v15  ;;  %1554 = vmatmul.mubr.msk.f32.vlgmr.msra.gmra.mrb[0].mxu0 %vm1018_vm10, %v998_v17 }
  0xc8   : > { %690 = vst.msk [vmem:[#allocation2 + $0x18] sm:$0xff] %vm686_vm6, %v645_v16  ;;  %563 = vrot.lane.b32.xlu1 %v1477_v12, %s1718_s11  ;;  %v1249_v16 = vld [vmem:[%s2261_s2 + $0x8] sm:$0xff] }
  0xc9   : > { %271 = vrot.lane.b32.xlu0 %v1476_v5, %s1716_s9  ;;  %v1467_v5 = vld [vmem:[%s1809_s7 + $0xe0] sm:$0xff] }
  0xca   : > { %v453_v19 = vpop.permute.xlu1 %452 }
  0xcb   : > { %v355_v20 = vpop.permute.xlu0 %354  ;;  %497 = vst.msk [vmem:[#allocation2 + $0x20] sm:$0xff] %vm492_vm4, %v453_v19 }
  0xcc   : > { %398 = vst.msk [vmem:[#allocation2 + $0x28] sm:$0xff] %vm392_vm3, %v355_v20  ;;  %950 = vrot.lane.b32.xlu1 %v1493_v18, %s1722_s24 }
  0xcd   : > { %658 = vrot.lane.b32.xlu0 %v1492_v11, %s1719_s21 }
  0xce   : > { %v840_v21 = vpop.permute.xlu1 %839 }
  0xcf   : > { %v745_v22 = vpop.permute.xlu0 %744  ;;  %886 = vst.msk [vmem:[#allocation2 + $0x10] sm:$0xff] %vm883_vm8, %v840_v21 }
  0xd0   : > { %790 = vst.msk [vmem:[#allocation2 + $0x18] sm:$0xff] %vm786_vm7, %v745_v22  ;;  %368 = vrot.lane.b32.xlu1 %v1492_v11, %s1715_s8 }
  0xd1   : > { %273 = vrot.lane.b32.xlu0 %v1477_v12, %s1716_s9  ;;  %v1498_v12 = vld [vmem:[%s1809_s7 + $0xda] sm:$0xff] }
  0xd2   : > { %v550_v23 = vpop.permute.xlu1 %549 }
  0xd3   : > { %v455_v24 = vpop.permute.xlu0 %454  ;;  %594 = vst.msk [vmem:[#allocation2 + $0x20] sm:$0xff] %vm589_vm5, %v550_v23 }
  0xd4   : > { %498 = vst.msk [vmem:[#allocation2 + $0x28] sm:$0xff] %vm492_vm4, %v455_v24  ;;  %758 = vrot.lane.b32.xlu1 %v1919_v33, %s1720_s22 }
  0xd5   : > { %660 = vrot.lane.b32.xlu0 %v1493_v18, %s1719_s21 }
  0xd6   : > { %v937_v25 = vpop.permute.xlu1 %936 }
  0xd7   : > { %v842_v26 = vpop.permute.xlu0 %841  ;;  %983 = vst.msk [vmem:[#allocation2 + $0x10] sm:$0xff] %vm980_vm9, %v937_v25 }
  0xd8   : > { %887 = vst.msk [vmem:[#allocation2 + $0x18] sm:$0xff] %vm883_vm8, %v842_v26  ;;  %468 = vrot.lane.b32.xlu1 %v1919_v33, %s1717_s10  ;;  %v1494_v33 = vld [vmem:[%s1809_s7 + $0xaa] sm:$0xff] }
  0xd9   : > { %370 = vrot.lane.b32.xlu0 %v1493_v18, %s1715_s8 }
  0xda   : > { %v552_v28 = vpop.permute.xlu1 %551 }
  0xdb   : > { %v260_v29 = vpop.permute.xlu0 %259  ;;  %595 = vst.msk [vmem:[#allocation2 + $0x28] sm:$0xff] %vm589_vm5, %v552_v28 }
  0xdc   : > { %302 = vst.msk [vmem:[#allocation2 + $0x30] sm:$0xff] %vm295_vm2, %v260_v29  ;;  %855 = vrot.lane.b32.xlu1 %v1478_v27, %s1721_s29 }
  0xdd   : > { %760 = vrot.lane.b32.xlu0 %v1931_v35, %s1720_s22 }
  0xde   : > { %v939_v30 = vpop.permute.xlu1 %938  ;;  %v999_v32 = vld [vmem:[#allocation2 + $0x10] sm:$0xff] }
  0xdf   : > { %v647_v31 = vpop.permute.xlu0 %646  ;;  %984 = vst.msk [vmem:[#allocation2 + $0x18] sm:$0xff] %vm980_vm9, %v939_v30  ;;  %1556 = vmatprep.mubr.msk.f32.mxu0 %vm1018_vm10, %v999_v32 }
  0xe0   : > { %691 = vst.msk [vmem:[#allocation2 + $0x20] sm:$0xff] %vm686_vm6, %v647_v31  ;;  %565 = vrot.lane.b32.xlu1 %v1478_v27, %s1718_s11 }
  0xe1   : > { %470 = vrot.lane.b32.xlu0 %v1931_v35, %s1717_s10  ;;  %v1495_v35 = vld [vmem:[%s1809_s7 + $0xb2] sm:$0xff] }
  0xe2   : > { %v357_v36 = vpop.permute.xlu1 %356 }
  0xe3   : > { %v262_v37 = vpop.permute.xlu0 %261  ;;  %399 = vst.msk [vmem:[#allocation2 + $0x30] sm:$0xff] %vm392_vm3, %v357_v36 }
  0xe4   : > { %303 = vst.msk [vmem:[#allocation2 + $0x38] sm:$0xff] %vm295_vm2, %v262_v37  ;;  %952 = vrot.lane.b32.xlu1 %v1494_v33, %s1722_s24 }
  0xe5   : > { %857 = vrot.lane.b32.xlu0 %v1479_v34, %s1721_s29 }
  0xe6   : > { %v747_v38 = vpop.permute.xlu1 %746  ;;  %v1000_v40 = vld [vmem:[#allocation2 + $0x18] sm:$0xff] }
  0xe7   : > { %v649_v39 = vpop.permute.xlu0 %648  ;;  %791 = vst.msk [vmem:[#allocation2 + $0x20] sm:$0xff] %vm786_vm7, %v747_v38  ;;  %1557 = vmatmul.mubr.msk.f32.gmra.mrb[2].mxu0 %vm1018_vm10, %v1000_v40 }
  0xe8   : > { %692 = vst.msk [vmem:[#allocation2 + $0x28] sm:$0xff] %vm686_vm6, %v649_v39  ;;  %567 = vrot.lane.b32.xlu1 %v1479_v34, %s1718_s11 }
  0xe9   : > { %275 = vrot.lane.b32.xlu0 %v1478_v27, %s1716_s9 }
  0xea   : > { %v457_v41 = vpop.permute.xlu1 %456 }
  0xeb   : > { %v359_v42 = vpop.permute.xlu0 %358  ;;  %499 = vst.msk [vmem:[#allocation2 + $0x30] sm:$0xff] %vm492_vm4, %v457_v41 }
  0xec   : > { %400 = vst.msk [vmem:[#allocation2 + $0x38] sm:$0xff] %vm392_vm3, %v359_v42  ;;  %954 = vrot.lane.b32.xlu1 %v1495_v35, %s1722_s24 }
  0xed   : > { %662 = vrot.lane.b32.xlu0 %v1494_v33, %s1719_s21 }
  0xee   : > { %v844_v43 = vpop.permute.xlu1 %843 }
  0xef   : > { %v749_v44 = vpop.permute.xlu0 %748  ;;  %888 = vst.msk [vmem:[#allocation2 + $0x20] sm:$0xff] %vm883_vm8, %v844_v43 }
  0xf0   : > { %792 = vst.msk [vmem:[#allocation2 + $0x28] sm:$0xff] %vm786_vm7, %v749_v44  ;;  %372 = vrot.lane.b32.xlu1 %v1494_v33, %s1715_s8 }
  0xf1   : > { %277 = vrot.lane.b32.xlu0 %v1479_v34, %s1716_s9 }
  0xf2   : > { %v554_v47 = vpop.permute.xlu1 %553 }
  0xf3   : > { %v459_v48 = vpop.permute.xlu0 %458  ;;  %596 = vst.msk [vmem:[#allocation2 + $0x30] sm:$0xff] %vm589_vm5, %v554_v47 }
  0xf4   : > { %500 = vst.msk [vmem:[#allocation2 + $0x38] sm:$0xff] %vm492_vm4, %v459_v48  ;;  %762 = vrot.lane.b32.xlu1 %v1464_v45, %s1720_s22 }
  0xf5   : > { %664 = vrot.lane.b32.xlu0 %v1495_v35, %s1719_s21 }
  0xf6   : > { %v941_v49 = vpop.permute.xlu1 %940 }
  0xf7   : > { %v846_v50 = vpop.permute.xlu0 %845  ;;  %985 = vst.msk [vmem:[#allocation2 + $0x20] sm:$0xff] %vm980_vm9, %v941_v49 }
  0xf8   : > { %889 = vst.msk [vmem:[#allocation2 + $0x28] sm:$0xff] %vm883_vm8, %v846_v50  ;;  %472 = vrot.lane.b32.xlu1 %v1464_v45, %s1717_s10 }
  0xf9   : > { %374 = vrot.lane.b32.xlu0 %v1495_v35, %s1715_s8 }
  0xfa   : > { %v556_v53 = vpop.permute.xlu1 %555 }
  0xfb   : > { %v264_v54 = vpop.permute.xlu0 %263  ;;  %597 = vst.msk [vmem:[#allocation2 + $0x38] sm:$0xff] %vm589_vm5, %v556_v53 }
  0xfc   : > { %304 = vst.msk [vmem:[#allocation2 + $0x40] sm:$0xff] %vm295_vm2, %v264_v54  ;;  %859 = vrot.lane.b32.xlu1 %v1480_v52, %s1721_s29 }
  0xfd   : > { %764 = vrot.lane.b32.xlu0 %v1465_v51, %s1720_s22 }
  0xfe   : > { %v943_v55 = vpop.permute.xlu1 %942  ;;  %v1001_v57 = vld [vmem:[#allocation2 + $0x20] sm:$0xff] }
  0xff   : > { %v651_v56 = vpop.permute.xlu0 %650  ;;  %986 = vst.msk [vmem:[#allocation2 + $0x28] sm:$0xff] %vm980_vm9, %v943_v55  ;;  %1559 = vmatprep.mubr.msk.f32.mxu0 %vm1018_vm10, %v1001_v57 }
 0x100   : > { %693 = vst.msk [vmem:[#allocation2 + $0x30] sm:$0xff] %vm686_vm6, %v651_v56  ;;  %569 = vrot.lane.b32.xlu1 %v1480_v52, %s1718_s11 }
 0x101   : > { %474 = vrot.lane.b32.xlu0 %v1465_v51, %s1717_s10 }
 0x102   : > { %v361_v60 = vpop.permute.xlu1 %360 }
 0x103   : > { %v266_v61 = vpop.permute.xlu0 %265  ;;  %401 = vst.msk [vmem:[#allocation2 + $0x40] sm:$0xff] %vm392_vm3, %v361_v60 }
 0x104   : > { %305 = vst.msk [vmem:[#allocation2 + $0x48] sm:$0xff] %vm295_vm2, %v266_v61  ;;  %956 = vrot.lane.b32.xlu1 %v1496_v59, %s1722_s24 }
 0x105   : > { %861 = vrot.lane.b32.xlu0 %v1481_v58, %s1721_s29 }
 0x106   : > { %v751_v62 = vpop.permute.xlu1 %750  ;;  %v1002_v0 = vld [vmem:[#allocation2 + $0x28] sm:$0xff] }
 0x107   : > { %v653_v63 = vpop.permute.xlu0 %652  ;;  %793 = vst.msk [vmem:[#allocation2 + $0x30] sm:$0xff] %vm786_vm7, %v751_v62  ;;  %1560 = vmatmul.mubr.msk.f32.gmra.mrb[4].mxu0 %vm1018_vm10, %v1002_v0 }
 0x108   : > { %694 = vst.msk [vmem:[#allocation2 + $0x38] sm:$0xff] %vm686_vm6, %v653_v63  ;;  %666 = vrot.lane.b32.xlu1 %v1496_v59, %s1719_s21 }
 0x109   : > { %571 = vrot.lane.b32.xlu0 %v1481_v58, %s1718_s11  ;;  %s171_s11 = sand.u32 1, %s1689_s12   ;;  %s1518_s12 = sshll.u32 (%p1790_p5), %s1701_s15, 2 }
 0x10a   : > { %v461_v2 = vpop.permute.xlu1 %460  ;;  %s1278_s28 = sadd.s32 (%p1790_p5), %s1697_s14, %s1518_s12 }
 0x10b   : > { %v363_v3 = vpop.permute.xlu0 %362  ;;  %501 = vst.msk [vmem:[#allocation2 + $0x40] sm:$0xff] %vm492_vm4, %v461_v2 }
 0x10c   : > { %402 = vst.msk [vmem:[#allocation2 + $0x48] sm:$0xff] %vm392_vm3, %v363_v3  ;;  %668 = vrot.lane.b32.xlu1 %v1497_v1, %s1719_s21  ;;  %s1396_s21 = sshll.u32 %s171_s11, 4 }
 0x10d   : > { %958 = vrot.lane.b32.xlu0 %v1497_v1, %s1722_s24 }
 0x10e   : > { %v848_v6 = vpop.permute.xlu1 %847 }
 0x10f   : > { %v753_v7 = vpop.permute.xlu0 %752  ;;  %890 = vst.msk [vmem:[#allocation2 + $0x30] sm:$0xff] %vm883_vm8, %v848_v6 }
 0x110   : > { %794 = vst.msk [vmem:[#allocation2 + $0x38] sm:$0xff] %vm786_vm7, %v753_v7  ;;  %768 = vrot.lane.b32.xlu1 %v1467_v5, %s1720_s22 }
 0x111   : > { %766 = vrot.lane.b32.xlu0 %v1466_v4, %s1720_s22  ;;  %s173_s22 = scalar_lea.vmem [#allocation3], %s1396_s21 }
 0x112   : > { %v558_v10 = vpop.permute.xlu1 %557 }
 0x113   : > { %v463_v11 = vpop.permute.xlu0 %462  ;;  %598 = vst.msk [vmem:[#allocation2 + $0x40] sm:$0xff] %vm589_vm5, %v558_v10 }
 0x114   : > { %502 = vst.msk [vmem:[#allocation2 + $0x48] sm:$0xff] %vm492_vm4, %v463_v11  ;;  %865 = vrot.lane.b32.xlu1 %v1483_v9, %s1721_s29 }
 0x115   : > { %863 = vrot.lane.b32.xlu0 %v1482_v8, %s1721_s29  ;;  %s1519_s29 = sshll.u32 (%p1790_p5), %s1278_s28, 3 }
 0x116   : > { %v945_v14 = vpop.permute.xlu1 %944  ;;  %s1280_s5 = scalar_lea.vmem (%p1790_p5), %s2262_s3, %s1519_s29 }
 0x117   : > { %v850_v15 = vpop.permute.xlu0 %849  ;;  %987 = vst.msk [vmem:[#allocation2 + $0x30] sm:$0xff] %vm980_vm9, %v945_v14 }
 0x118   : > { %891 = vst.msk [vmem:[#allocation2 + $0x38] sm:$0xff] %vm883_vm8, %v850_v15  ;;  %962 = vrot.lane.b32.xlu1 %v1499_v13, %s1722_s24 }
 0x119   : > { %960 = vrot.lane.b32.xlu0 %v1498_v12, %s1722_s24 }
 0x11a   : > { %v560_v17 = vpop.permute.xlu1 %559 }
 0x11b   : > { %v268_v18 = vpop.permute.xlu0 %267  ;;  %599 = vst.msk [vmem:[#allocation2 + $0x48] sm:$0xff] %vm589_vm5, %v560_v17 }
 0x11c   : > { %306 = vst.msk [vmem:[#allocation2 + $0x50] sm:$0xff] %vm295_vm2, %v268_v18  ;;  %1257 = vperm.xlu1 %1658, %v1249_v16  }
 0x11e   : > { %v947_v19 = vpop.permute.xlu1 %946  ;;  %v1003_v21 = vld [vmem:[#allocation2 + $0x30] sm:$0xff] }
 0x11f   : > { %v655_v20 = vpop.permute.xlu0 %654  ;;  %988 = vst.msk [vmem:[#allocation2 + $0x38] sm:$0xff] %vm980_vm9, %v947_v19  ;;  %1562 = vmatprep.mubr.msk.f32.mxu0 %vm1018_vm10, %v1003_v21 }
 0x120   : > { %695 = vst.msk [vmem:[#allocation2 + $0x40] sm:$0xff] %vm686_vm6, %v655_v20 }
 0x122   : > { %v365_v22 = vpop.permute.xlu1 %364 }
 0x123   : > { %v270_v23 = vpop.permute.xlu0 %269  ;;  %403 = vst.msk [vmem:[#allocation2 + $0x50] sm:$0xff] %vm392_vm3, %v365_v22 }
 0x124   : > { %307 = vst.msk [vmem:[#allocation2 + $0x58] sm:$0xff] %vm295_vm2, %v270_v23  ;;  %v1248_v23 = vld [vmem:[%s2261_s2] sm:$0xff] }
 0x125   : > { %1252 = vperm.xlu0 %1657, %v1248_v23  }
 0x126   : > { %v755_v24 = vpop.permute.xlu1 %754  ;;  %v1004_v26 = vld [vmem:[#allocation2 + $0x38] sm:$0xff] }
 0x127   : > { %v657_v25 = vpop.permute.xlu0 %656  ;;  %795 = vst.msk [vmem:[#allocation2 + $0x40] sm:$0xff] %vm786_vm7, %v755_v24  ;;  %1563 = vmatmul.mubr.msk.f32.gmra.mrb[6].mxu0 %vm1018_vm10, %v1004_v26 }
 0x128   : > { %696 = vst.msk [vmem:[#allocation2 + $0x48] sm:$0xff] %vm686_vm6, %v657_v25 }
 0x12a   : > { %v465_v27 = vpop.permute.xlu1 %464 }
 0x12b   : > { %v367_v28 = vpop.permute.xlu0 %366  ;;  %503 = vst.msk [vmem:[#allocation2 + $0x50] sm:$0xff] %vm492_vm4, %v465_v27 }
 0x12c   : > { %404 = vst.msk [vmem:[#allocation2 + $0x58] sm:$0xff] %vm392_vm3, %v367_v28 }
 0x12e   : > { %v852_v29 = vpop.permute.xlu1 %851 }
 0x12f   : > { %v757_v30 = vpop.permute.xlu0 %756  ;;  %892 = vst.msk [vmem:[#allocation2 + $0x40] sm:$0xff] %vm883_vm8, %v852_v29 }
 0x130   : > { %796 = vst.msk [vmem:[#allocation2 + $0x48] sm:$0xff] %vm786_vm7, %v757_v30 }
 0x132   : > { %v562_v31 = vpop.permute.xlu1 %561 }
 0x133   : > { %v467_v32 = vpop.permute.xlu0 %466  ;;  %600 = vst.msk [vmem:[#allocation2 + $0x50] sm:$0xff] %vm589_vm5, %v562_v31 }
 0x134   : > { %504 = vst.msk [vmem:[#allocation2 + $0x58] sm:$0xff] %vm492_vm4, %v467_v32 }
 0x136   : > { %v949_v33 = vpop.permute.xlu1 %948 }
 0x137   : > { %v854_v34 = vpop.permute.xlu0 %853  ;;  %989 = vst.msk [vmem:[#allocation2 + $0x40] sm:$0xff] %vm980_vm9, %v949_v33 }
 0x138   : > { %893 = vst.msk [vmem:[#allocation2 + $0x48] sm:$0xff] %vm883_vm8, %v854_v34 }
 0x13a   : > { %v564_v36 = vpop.permute.xlu1 %563 }
 0x13b   : > { %v272_v37 = vpop.permute.xlu0 %271  ;;  %601 = vst.msk [vmem:[#allocation2 + $0x58] sm:$0xff] %vm589_vm5, %v564_v36 }
 0x13c   : > { %308 = vst.msk [vmem:[#allocation2 + $0x60] sm:$0xff] %vm295_vm2, %v272_v37 }
 0x13e   : > { %v951_v38 = vpop.permute.xlu1 %950  ;;  %v1005_v40 = vld [vmem:[#allocation2 + $0x40] sm:$0xff] }
 0x13f   : > { %v659_v39 = vpop.permute.xlu0 %658  ;;  %990 = vst.msk [vmem:[#allocation2 + $0x48] sm:$0xff] %vm980_vm9, %v951_v38  ;;  %1565 = vmatprep.mubr.msk.f32.mxu1 %vm1018_vm10, %v1005_v40 }
 0x140   : > { %697 = vst.msk [vmem:[#allocation2 + $0x50] sm:$0xff] %vm686_vm6, %v659_v39 }
 0x142   : > { %v369_v35 = vpop.permute.xlu1 %368 }
 0x143   : > { %v274_v41 = vpop.permute.xlu0 %273  ;;  %405 = vst.msk [vmem:[#allocation2 + $0x60] sm:$0xff] %vm392_vm3, %v369_v35 }
 0x144   : > { %309 = vst.msk [vmem:[#allocation2 + $0x68] sm:$0xff] %vm295_vm2, %v274_v41 }
 0x146   : > { %v759_v42 = vpop.permute.xlu1 %758  ;;  %v1006_v44 = vld [vmem:[#allocation2 + $0x48] sm:$0xff] }
 0x147   : > { %v661_v43 = vpop.permute.xlu0 %660  ;;  %797 = vst.msk [vmem:[#allocation2 + $0x50] sm:$0xff] %vm786_vm7, %v759_v42  ;;  %1566 = vmatmul.mubr.msk.f32.vlgmr.msra.gmra.mrb[0].mxu1 %vm1018_vm10, %v1006_v44 }
 0x148   : > { %698 = vst.msk [vmem:[#allocation2 + $0x58] sm:$0xff] %vm686_vm6, %v661_v43 }
 0x14a   : > { %v469_v45 = vpop.permute.xlu1 %468 }
 0x14b   : > { %v371_v46 = vpop.permute.xlu0 %370  ;;  %505 = vst.msk [vmem:[#allocation2 + $0x60] sm:$0xff] %vm492_vm4, %v469_v45 }
 0x14c   : > { %406 = vst.msk [vmem:[#allocation2 + $0x68] sm:$0xff] %vm392_vm3, %v371_v46 }
 0x14e   : > { %v856_v47 = vpop.permute.xlu1 %855 }
 0x14f   : > { %v761_v48 = vpop.permute.xlu0 %760  ;;  %894 = vst.msk [vmem:[#allocation2 + $0x50] sm:$0xff] %vm883_vm8, %v856_v47 }
 0x150   : > { %798 = vst.msk [vmem:[#allocation2 + $0x58] sm:$0xff] %vm786_vm7, %v761_v48 }
 0x152   : > { %v566_v49 = vpop.permute.xlu1 %565 }
 0x153   : > { %v471_v50 = vpop.permute.xlu0 %470  ;;  %602 = vst.msk [vmem:[#allocation2 + $0x60] sm:$0xff] %vm589_vm5, %v566_v49 }
 0x154   : > { %506 = vst.msk [vmem:[#allocation2 + $0x68] sm:$0xff] %vm492_vm4, %v471_v50 }
 0x156   : > { %v953_v51 = vpop.permute.xlu1 %952 }
 0x157   : > { %v858_v52 = vpop.permute.xlu0 %857  ;;  %991 = vst.msk [vmem:[#allocation2 + $0x50] sm:$0xff] %vm980_vm9, %v953_v51 }
 0x158   : > { %895 = vst.msk [vmem:[#allocation2 + $0x58] sm:$0xff] %vm883_vm8, %v858_v52 }
 0x15a   : > { %v568_v53 = vpop.permute.xlu1 %567 }
 0x15b   : > { %v276_v54 = vpop.permute.xlu0 %275  ;;  %603 = vst.msk [vmem:[#allocation2 + $0x68] sm:$0xff] %vm589_vm5, %v568_v53 }
 0x15c   : > { %310 = vst.msk [vmem:[#allocation2 + $0x70] sm:$0xff] %vm295_vm2, %v276_v54 }
 0x15e   : > { %v955_v55 = vpop.permute.xlu1 %954  ;;  %v1007_v57 = vld [vmem:[#allocation2 + $0x50] sm:$0xff] }
 0x15f   : > { %v663_v56 = vpop.permute.xlu0 %662  ;;  %992 = vst.msk [vmem:[#allocation2 + $0x58] sm:$0xff] %vm980_vm9, %v955_v55  ;;  %1568 = vmatprep.mubr.msk.f32.mxu1 %vm1018_vm10, %v1007_v57 }
 0x160   : > { %699 = vst.msk [vmem:[#allocation2 + $0x60] sm:$0xff] %vm686_vm6, %v663_v56 }
 0x162   : > { %v373_v59 = vpop.permute.xlu1 %372 }
 0x163   : > { %v278_v58 = vpop.permute.xlu0 %277  ;;  %407 = vst.msk [vmem:[#allocation2 + $0x70] sm:$0xff] %vm392_vm3, %v373_v59 }
 0x164   : > { %311 = vst.msk [vmem:[#allocation2 + $0x78] sm:$0xff] %vm295_vm2, %v278_v58 }
 0x166   : > { %v763_v61 = vpop.permute.xlu1 %762  ;;  %v1008_v62 = vld [vmem:[#allocation2 + $0x58] sm:$0xff] }
 0x167   : > { %v665_v60 = vpop.permute.xlu0 %664  ;;  %799 = vst.msk [vmem:[#allocation2 + $0x60] sm:$0xff] %vm786_vm7, %v763_v61  ;;  %1569 = vmatmul.mubr.msk.f32.gmra.mrb[2].mxu1 %vm1018_vm10, %v1008_v62 }
 0x168   : > { %700 = vst.msk [vmem:[#allocation2 + $0x68] sm:$0xff] %vm686_vm6, %v665_v60 }
 0x16a   : > { %v473_v0 = vpop.permute.xlu1 %472 }
 0x16b   : > { %v375_v63 = vpop.permute.xlu0 %374  ;;  %507 = vst.msk [vmem:[#allocation2 + $0x70] sm:$0xff] %vm492_vm4, %v473_v0 }
 0x16c   : > { %408 = vst.msk [vmem:[#allocation2 + $0x78] sm:$0xff] %vm392_vm3, %v375_v63 }
 0x16e   : > { %v860_v2 = vpop.permute.xlu1 %859 }
 0x16f   : > { %v765_v1 = vpop.permute.xlu0 %764  ;;  %896 = vst.msk [vmem:[#allocation2 + $0x60] sm:$0xff] %vm883_vm8, %v860_v2 }
 0x170   : > { %800 = vst.msk [vmem:[#allocation2 + $0x68] sm:$0xff] %vm786_vm7, %v765_v1 }
 0x172   : > { %v570_v4 = vpop.permute.xlu1 %569 }
 0x173   : > { %v475_v3 = vpop.permute.xlu0 %474  ;;  %604 = vst.msk [vmem:[#allocation2 + $0x70] sm:$0xff] %vm589_vm5, %v570_v4 }
 0x174   : > { %508 = vst.msk [vmem:[#allocation2 + $0x78] sm:$0xff] %vm492_vm4, %v475_v3 }
 0x176   : > { %v957_v6 = vpop.permute.xlu1 %956 }
 0x177   : > { %v862_v5 = vpop.permute.xlu0 %861  ;;  %993 = vst.msk [vmem:[#allocation2 + $0x60] sm:$0xff] %vm980_vm9, %v957_v6 }
 0x178   : > { %897 = vst.msk [vmem:[#allocation2 + $0x68] sm:$0xff] %vm883_vm8, %v862_v5 }
 0x17a   : > { %v667_v8 = vpop.permute.xlu1 %666 }
 0x17b   : > { %v572_v7 = vpop.permute.xlu0 %571  ;;  %701 = vst.msk [vmem:[#allocation2 + $0x70] sm:$0xff] %vm686_vm6, %v667_v8 }
 0x17c   : > { %605 = vst.msk [vmem:[#allocation2 + $0x78] sm:$0xff] %vm589_vm5, %v572_v7 }
 0x17e   : > { %v669_v10 = vpop.permute.xlu1 %668  ;;  %v1009_v11 = vld [vmem:[#allocation2 + $0x60] sm:$0xff] }
 0x17f   : > { %v959_v9 = vpop.permute.xlu0 %958  ;;  %702 = vst.msk [vmem:[#allocation2 + $0x78] sm:$0xff] %vm686_vm6, %v669_v10  ;;  %1571 = vmatprep.mubr.msk.f32.mxu1 %vm1018_vm10, %v1009_v11 }
 0x180   : > { %994 = vst.msk [vmem:[#allocation2 + $0x68] sm:$0xff] %vm980_vm9, %v959_v9 }
 0x182   : > { %v769_v13 = vpop.permute.xlu1 %768 }
 0x183   : > { %v767_v12 = vpop.permute.xlu0 %766  ;;  %802 = vst.msk [vmem:[#allocation2 + $0x78] sm:$0xff] %vm786_vm7, %v769_v13 }
 0x184   : > { %801 = vst.msk [vmem:[#allocation2 + $0x70] sm:$0xff] %vm786_vm7, %v767_v12 }
 0x186   : > { %v866_v15 = vpop.permute.xlu1 %865 }
 0x187   : > { %v864_v14 = vpop.permute.xlu0 %863  ;;  %v1010_v16 = vld [vmem:[#allocation2 + $0x68] sm:$0xff]  ;;  %899 = vst.msk [vmem:[#allocation2 + $0x78] sm:$0xff] %vm883_vm8, %v866_v15 }
 0x188   : > { %898 = vst.msk [vmem:[#allocation2 + $0x70] sm:$0xff] %vm883_vm8, %v864_v14  ;;  %1572 = vmatmul.mubr.msk.f32.gmra.mrb[4].mxu1 %vm1018_vm10, %v1010_v16 }
 0x18a   : > { %v963_v18 = vpop.permute.xlu1 %962 }
 0x18b   : > { %v961_v17 = vpop.permute.xlu0 %960  ;;  %996 = vst.msk [vmem:[#allocation2 + $0x78] sm:$0xff] %vm980_vm9, %v963_v18 }
 0x18c   : > { %995 = vst.msk [vmem:[#allocation2 + $0x70] sm:$0xff] %vm980_vm9, %v961_v17 }
 0x192   : > { %v1012_v20 = vld [vmem:[#allocation2 + $0x78] sm:$0xff] }
 0x193   : > { %v1011_v19 = vld [vmem:[#allocation2 + $0x70] sm:$0xff] }
 0x194   : > { %1574 = vmatprep.mubr.msk.f32.mxu1 %vm1018_vm10, %v1011_v19 }
 0x195   : > { %1575 = vmatmul.mubr.msk.f32.gmra.mrb[6].mxu1 %vm1018_vm10, %v1012_v20 }
 0x19a   : > { %v1555_v21 = vpop.f32.mrb[0].mxu0 }
 0x19b   : > { %v1137_v22 = vpop.f32.mrb[1].mxu0  ;;  %v1258_v39 = vpop.permute.xlu1 %1257 }
 0x19c   : > { %1216 = vxpose.xlu1.b32.start [1/16] (narrow) %v1137_v22, 16 }
 0x1a0   : > { %1217 = vxpose.xlu1.b32.cont [2/16] (narrow) %v1555_v21, 16 }
 0x1a4   : > { %v1253_v40 = vpop.permute.xlu0 %1252 }
 0x1ba   : > { %v1558_v24 = vpop.f32.mrb[2].mxu0 }
 0x1bb   : > { %v1147_v25 = vpop.f32.mrb[3].mxu0 }
 0x1bc   : > { %1218 = vxpose.xlu1.b32.cont [3/16] (narrow) %v1147_v25, 16 }
 0x1c0   : > { %1219 = vxpose.xlu1.b32.cont [4/16] (narrow) %v1558_v24, 16 }
 0x1da   : > { %v1561_v26 = vpop.f32.mrb[4].mxu0 }
 0x1db   : > { %v1157_v27 = vpop.f32.mrb[5].mxu0 }
 0x1dc   : > { %1220 = vxpose.xlu1.b32.cont [5/16] (narrow) %v1157_v27, 16 }
 0x1e0   : > { %1221 = vxpose.xlu1.b32.cont [6/16] (narrow) %v1561_v26, 16 }
 0x1fa   : > { %v1564_v28 = vpop.f32.mrb[6].mxu0 }
 0x1fb   : > { %v1167_v29 = vpop.f32.mrb[7].mxu0 }
 0x1fc   : > { %1222 = vxpose.xlu1.b32.cont [7/16] (narrow) %v1167_v29, 16 }
 0x200   : > { %1223 = vxpose.xlu1.b32.cont [8/16] (narrow) %v1564_v28, 16 }
 0x21a   : > { %v1567_v30 = vpop.f32.mrb[0].mxu1 }
 0x21b   : > { %v1177_v31 = vpop.f32.mrb[1].mxu1 }
 0x21c   : > { %1224 = vxpose.xlu1.b32.cont [9/16] (narrow) %v1177_v31, 16 }
 0x220   : > { %1225 = vxpose.xlu1.b32.cont [10/16] (narrow) %v1567_v30, 16 }
 0x23a   : > { %v1570_v32 = vpop.f32.mrb[2].mxu1 }
 0x23b   : > { %v1187_v33 = vpop.f32.mrb[3].mxu1 }
 0x23c   : > { %1226 = vxpose.xlu1.b32.cont [11/16] (narrow) %v1187_v33, 16 }
 0x240   : > { %1227 = vxpose.xlu1.b32.cont [12/16] (narrow) %v1570_v32, 16 }
 0x25b   : > { %v1573_v34 = vpop.f32.mrb[4].mxu1 }
 0x25c   : > { %v1197_v36 = vpop.f32.mrb[5].mxu1 }
 0x25d   : > { %1228 = vxpose.xlu1.b32.cont [13/16] (narrow) %v1197_v36, 16 }
 0x261   : > { %1229 = vxpose.xlu1.b32.cont [14/16] (narrow) %v1573_v34, 16 }
 0x268   : > { %v1576_v37 = vpop.f32.mrb[6].mxu1 }
 0x269   : > { %v1207_v38 = vpop.f32.mrb[7].mxu1 }
 0x26a   : > { %1230 = vxpose.xlu1.b32.cont [15/16] (narrow) %v1207_v38, 16 }
 0x26e   : > { %1231 = vxpose.xlu1.b32.end [16/16] (narrow) %v1576_v37, 16 }
 0x2b2   : > { %v1232_v35 = vpop.trf.xlu1 }
 0x2b3   : > { %v1260_v41 = vadd.f32 %v1253_v40, %v1232_v35 }
 0x2b5   : > { %vm1262_vm11 = vcmp.ge.f32.partialorder %v1260_v41, 0.0  ;;  %v1264_v42 = vmul.f32 0.01, %v1260_v41 }
 0x2b6   : > { %v1233_v43 = vpop.trf.xlu1  ;;  %1276 = sbr.rel (!%p1790_p5) target bundleno = 709 (0x2c5), region = 36 }
 0x2b7   : > { %v1266_v44 = vsel %vm1262_vm11, %v1260_v41, %v1264_v42  ;;  %v1261_v45 = vadd.f32 %v1258_v39, %v1233_v43 }
 0x2b8   : > { %1268 = vst [vmem:[%s173_s22] sm:$0xff] %v1266_v44 }
 0x2b9   : > { %vm1263_vm12 = vcmp.ge.f32.partialorder %v1261_v45, 0.0  ;;  %v1265_v46 = vmul.f32 0.01, %v1261_v45 }
 0x2bb   : > { %v1267_v47 = vsel %vm1263_vm12, %v1261_v45, %v1265_v46 }
 0x2bc   : > { %1269 = vst [vmem:[%s173_s22 + $0x8] sm:$0xff] %v1267_v47 }
 0x2bf   : > { %v1310_v48 = vld [vmem:[%s173_s22] sm:$0xff] }
 0x2c0   : > { %1311 = vst [vmem:[%s1280_s5] sm:$0xff] %v1310_v48 }
 0x2c3   : > { %v1312_v49 = vld [vmem:[%s173_s22 + $0x8] sm:$0xff] }
 0x2c4   : > { %1313 = vst [vmem:[%s1280_s5 + $0x10] sm:$0xff] %v1312_v49 }
 0x2c5 PF: > { %s13_s18 = sadd.s32 1, %s1713_s18   ;;  %s2264_s12 = smov %s1693_s13 }
 0x2c6   : > { %p10_p10 = scmp.ge.s32.totalorder %s13_s18, 6   ;;  %s2265_s13 = smov %s1801_s27 }
 0x2c7   : > { %s2266_s14 = smov %s1705_s16  ;;  %s2267_s15 = smov %s1709_s17 }
 0x2c8   : > { %s2268_s16 = smov %s2271_s19  ;;  %s2269_s17 = smov %s2275_s20 }
 0x2c9   :  { %12 = sbr.rel (!%p10_p10) target bundleno = 4 (0x4), region = 103 }

</bundles_post_ra>
